<compile_context>
chip_gen: v7x
topology: tpu7x:2x2x1
jax: 0.10.0
libtpu: 0.0.40
codegen_flags: <defaults>
</compile_context>

<pallas_src>
import functools

import jax
import jax.numpy as jnp
from jax.experimental import pallas as pl
from jax.experimental.pallas import tpu as pltpu

_HID = 128  # lane-dense padded hidden width (real hidden = 64)


def _round_up(x, m):
    return ((x + m - 1) // m) * m


# --------------------------------------------------------------------------- #
# Kernel: 6 matmuls (one fused front layer), 4 tanh layers, 1 ReLU.
# All operands and the output are lane-dense (multiples of 128 lanes).
# --------------------------------------------------------------------------- #
def hutter_net_kernel(x_ref,
                      wf_ref, bf_ref,
                      w1s_ref, w1r_ref, b1_ref,
                      w2_ref, b2_ref,
                      w3_ref, b3_ref,
                      wo_ref, bo_ref,
                      out_ref):
    dot = functools.partial(jnp.dot, preferred_element_type=jnp.float32)

    # Fused front layer: one K=128 matmul produces both the states_in
    # pre-activation (lanes [0:_HID)) and the banded-conv pre-activation
    # (lanes [_HID:)).  Column t*20+o of the conv part is the Conv1d output
    # at time t, channel o.
    front = dot(x_ref[...], wf_ref[...]) + bf_ref[...]
    state = jnp.tanh(front[:, :_HID])                 # padding lanes stay 0
    conv = jnp.maximum(front[:, _HID:], 0.0)          # padding lanes stay 0

    # fc1 on hstack([state, conv]) expressed as two matmuls (no concat/relayout)
    h1 = jnp.tanh(dot(state, w1s_ref[...]) + dot(conv, w1r_ref[...]) + b1_ref[...])
    h2 = jnp.tanh(dot(h1, w2_ref[...]) + b2_ref[...])
    h3 = jnp.tanh(dot(h2, w3_ref[...]) + b3_ref[...])

    # fc_out is padded to 128 lanes (zero weight columns / zero bias), so this
    # is an unmasked lane-dense store; the wrapper slices off [:, :out_size].
    out_ref[...] = dot(h3, wo_ref[...]) + bo_ref[...]


# --------------------------------------------------------------------------- #
# One-time parameter re-layout (hoisted OUT of the per-call path).
# --------------------------------------------------------------------------- #
def prepare_params(params, ref_length):
    f32 = jnp.float32
    Wc = params["Wconv"].astype(f32)          # (20, Cin, 3)   (o, c, k)
    out_ch, cin, ksz = Wc.shape
    L = ref_length
    T = L - ksz + 1                           # conv output length
    CP = _round_up(out_ch * T, 128)           # lane-padded conv width
    state_dim = params["Ws"].shape[1]
    out_size = params["Wo"].shape[0]
    k_in = _round_up(state_dim + L * cin, 128)    # fused front contraction dim
    out_pad = _round_up(out_size, 128)            # lane-padded output width

    # --- Conv1d folded into a banded matmul:  conv[b, t*20+o] =
    #     sum_{k,c} ref[b, t+k, c] * Wc[o, c, k]  + bconv[o]
    wbig = jnp.zeros((L * cin, CP), f32)
    for t in range(T):
        for k in range(ksz):
            wbig = wbig.at[(t + k) * cin:(t + k + 1) * cin,
                           t * out_ch:(t + 1) * out_ch].set(Wc[:, :, k].T)

    # --- Fused front weight: block-diagonal [ Ws.T  0 ; 0  wbig ] ------------
    #     rows  [0:state_dim)                 -> state columns [0:_HID)
    #     rows  [state_dim:state_dim+L*cin)   -> conv  columns [_HID:_HID+CP)
    wfront = jnp.zeros((k_in, _HID + CP), f32)
    wfront = wfront.at[:state_dim, :64].set(params["Ws"].astype(f32).T)
    wfront = wfront.at[state_dim:state_dim + L * cin, _HID:].set(wbig)
    bfront = jnp.zeros((1, _HID + CP), f32)
    bfront = bfront.at[0, :64].set(params["bs"].astype(f32))
    bfront = bfront.at[0, _HID:_HID + out_ch * T].set(
        jnp.tile(params["bconv"].astype(f32), T))

    # --- dense layers: transpose + zero-pad to 128 lanes --------------------
    def pad_w(w_t, rows, cols):               # w_t already (in, out)
        return jnp.zeros((rows, cols), f32).at[:w_t.shape[0], :w_t.shape[1]].set(w_t)

    def pad_b(b, cols):
        b = b.astype(f32)
        return jnp.zeros((1, cols), f32).at[0, :b.shape[0]].set(b)

    W1 = params["W1"].astype(f32)             # (64, 64 + 20*T)
    w1s = W1[:, :64].T                        # (64, 64)  state part
    # PyTorch flattens the conv as (B, 20, T) -> index o*T + t; our conv lanes
    # are t*20 + o, so permute the fc1 ref-weights accordingly.
    w1r = jnp.transpose(W1[:, 64:].reshape(64, out_ch, T), (2, 1, 0)).reshape(T * out_ch, 64)

    return dict(
        wfront=wfront, bfront=bfront,
        w1s=pad_w(w1s, _HID, _HID),
        w1r=pad_w(w1r, CP, _HID),
        b1=pad_b(params["b1"], _HID),
        w2=pad_w(params["W2"].astype(f32).T, _HID, _HID),
        b2=pad_b(params["b2"], _HID),
        w3=pad_w(params["W3"].astype(f32).T, _HID, _HID),
        b3=pad_b(params["b3"], _HID),
        wo=pad_w(params["Wo"].astype(f32).T, _HID, out_pad),
        bo=pad_b(params["bo"], out_pad),
    )


# --------------------------------------------------------------------------- #
# Batch tiling: large tiles to amortize per-grid-step overhead, but keep >=2
# grid steps for large batches so the "parallel" axis can shard across both
# v7x TensorCores.  1024-row tiles fit comfortably in scoped VMEM on all of
# v5e / v6e / v7x (inputs+outputs ~2 MB double-buffered, weights ~0.5 MB).
# --------------------------------------------------------------------------- #
def _pick_batch_tile(batch):
    b8 = _round_up(batch, 8)
    if b8 <= 16:
        return b8, b8
    block = min(1024, _round_up(-(-b8 // 2), 8))   # ~half the batch, capped
    b_pad = _round_up(b8, block)
    return block, b_pad


# --------------------------------------------------------------------------- #
# Forward wrapper (conv=True, hist_conv=False, is_seq=False).
# --------------------------------------------------------------------------- #
def net_forward(history, ref, prep, *, out_size):
    f32 = jnp.float32
    B, state_dim = history.shape
    _, L, cin = ref.shape
    k_in = prep["wfront"].shape[0]
    front_w = prep["wfront"].shape[1]
    out_pad = prep["wo"].shape[1]

    # Single fused, zero-padded, lane-dense input slab: [history | ref_flat | 0]
    x = jnp.concatenate(
        [history.astype(f32), ref.reshape(B, L * cin).astype(f32)], axis=1)
    used = state_dim + L * cin

    block_b, b_pad = _pick_batch_tile(B)
    x = jnp.pad(x, ((0, b_pad - B), (0, k_in - used)))
    grid = (b_pad // block_b,)

    weights = (prep["wfront"], prep["bfront"],
               prep["w1s"], prep["w1r"], prep["b1"],
               prep["w2"], prep["b2"], prep["w3"], prep["b3"],
               prep["wo"], prep["bo"])

    def full_spec(w):  # weights: constant block index -> resident in VMEM
        return pl.BlockSpec(w.shape, lambda i: (0, 0))

    flops = 2 * b_pad * (k_in * front_w               # fused front layer
                         + _HID * _HID                # fc1 (state part)
                         + (front_w - _HID) * _HID    # fc1 (conv part)
                         + 2 * _HID * _HID            # fc2, fc3
                         + _HID * out_pad)            # fc_out
    bytes_accessed = (int(x.size) * 4
                      + sum(int(w.size) * 4 for w in weights)
                      + b_pad * out_pad * 4)

    out = pl.pallas_call(
        hutter_net_kernel,
        out_shape=jax.ShapeDtypeStruct((b_pad, out_pad), f32),
        grid=grid,
        in_specs=[pl.BlockSpec((block_b, k_in), lambda i: (i, 0))]
                 + [full_spec(w) for w in weights],
        out_specs=pl.BlockSpec((block_b, out_pad), lambda i: (i, 0)),
        compiler_params=pltpu.CompilerParams(
            dimension_semantics=("parallel",)),
        cost_estimate=pl.CostEstimate(
            flops=flops,
            transcendentals=4 * b_pad * _HID,
            bytes_accessed=bytes_accessed),
    )(x, *weights)

    return out[:B, :out_size]


# --------------------------------------------------------------------------- #
# Pure-JAX reference with exact PyTorch semantics (for verification).
# --------------------------------------------------------------------------- #
def net_reference(history, ref, params):
    state = jnp.tanh(history @ params["Ws"].T + params["bs"])
    ref_t = jnp.transpose(ref, (0, 2, 1))                    # (B, Cin, L)  NCW
    B, _, L = ref_t.shape
    T = L - 2
    Wc = params["Wconv"]                                     # (20, Cin, 3)
    conv = params["bconv"][None, :, None] + sum(
        jnp.einsum("oc,bct->bot", Wc[:, :, k], ref_t[:, :, k:k + T]) for k in range(3))
    ref_flat = jnp.maximum(conv, 0.0).reshape(B, -1)         # (B, 20*T), (o, t) order
    x = jnp.concatenate([state, ref_flat], axis=1)
    h = jnp.tanh(x @ params["W1"].T + params["b1"])
    h = jnp.tanh(h @ params["W2"].T + params["b2"])
    h = jnp.tanh(h @ params["W3"].T + params["b3"])
    return h @ params["Wo"].T + params["bo"]


def init_params(key, state_dim, ref_length, ref_dim, out_size):
    reshape_len = 20 * (ref_length - 2)
    keys = jax.random.split(key, 12)

    def w(k, shape, fan_in):
        return (jax.random.normal(k, shape, jnp.float32) / jnp.sqrt(fan_in)).astype(jnp.float32)

    return {
        "Ws": w(keys[0], (64, state_dim), state_dim),
        "bs": w(keys[1], (64,), state_dim),
        "Wconv": w(keys[2], (20, ref_dim, 3), 3 * ref_dim),
        "bconv": w(keys[3], (20,), 3 * ref_dim),
        "W1": w(keys[4], (64, 64 + reshape_len), 64 + reshape_len),
        "b1": w(keys[5], (64,), 64 + reshape_len),
        "W2": w(keys[6], (64, 64), 64),
        "b2": w(keys[7], (64,), 64),
        "W3": w(keys[8], (64, 64), 64),
        "b3": w(keys[9], (64,), 64),
        "Wo": w(keys[10], (out_size, 64), 64),
        "bo": w(keys[11], (out_size,), 64),
    }


if __name__ == "__main__":
    B, state_dim, ref_length, ref_dim, out_size = 8, 12, 10, 9, 4

    root = jax.random.PRNGKey(0)
    k_hist, k_ref, k_params = jax.random.split(root, 3)

    history = jax.random.normal(k_hist, (B, state_dim), jnp.float32)
    ref = jax.random.normal(k_ref, (B, ref_length, ref_dim), jnp.float32)
    params = init_params(k_params, state_dim, ref_length, ref_dim, out_size)

    # One-time parameter re-layout (do NOT repeat per inference call).
    prep = prepare_params(params, ref_length)

    fwd = jax.jit(functools.partial(net_forward, out_size=out_size))
    out = jax.block_until_ready(fwd(history, ref, prep))
    expected = jax.block_until_ready(net_reference(history, ref, params))

    assert out.shape == (B, out_size)
    assert jnp.allclose(out, expected, atol=1e-4, rtol=1e-4), (
        f"mismatch: max abs err = {jnp.max(jnp.abs(out - expected))}")
    print("KERNEL_OK")
</pallas_src>

<mosaic_0001>
module attributes {stable_mosaic.version = 11 : i64} {
  func.func @hutter_net_kernel(%arg0: i32, %arg1: memref<8x128xf32, #tpu.memory_space<vmem>>, %arg2: memref<128x384xf32, #tpu.memory_space<vmem>>, %arg3: memref<1x384xf32, #tpu.memory_space<vmem>>, %arg4: memref<128x128xf32, #tpu.memory_space<vmem>>, %arg5: memref<256x128xf32, #tpu.memory_space<vmem>>, %arg6: memref<1x128xf32, #tpu.memory_space<vmem>>, %arg7: memref<128x128xf32, #tpu.memory_space<vmem>>, %arg8: memref<1x128xf32, #tpu.memory_space<vmem>>, %arg9: memref<128x128xf32, #tpu.memory_space<vmem>>, %arg10: memref<1x128xf32, #tpu.memory_space<vmem>>, %arg11: memref<128x128xf32, #tpu.memory_space<vmem>>, %arg12: memref<1x128xf32, #tpu.memory_space<vmem>>, %arg13: memref<8x128xf32, #tpu.memory_space<vmem>>) attributes {dimension_semantics = [#tpu.dimension_semantics<parallel>], iteration_bounds = array<i64: 1>, scalar_prefetch = 0 : i64, scratch_operands = 0 : i64, tpu.core_type = #tpu.core_type<tc>, window_params = [{transform_indices = @transform_0, window_bounds = array<i64: 8, 128>}, {pipeline_mode = #tpu.pipeline_mode<synchronous>, transform_indices = @transform_1, window_bounds = array<i64: 128, 384>}, {pipeline_mode = #tpu.pipeline_mode<synchronous>, transform_indices = @transform_2, window_bounds = array<i64: 1, 384>}, {pipeline_mode = #tpu.pipeline_mode<synchronous>, transform_indices = @transform_3, window_bounds = array<i64: 128, 128>}, {pipeline_mode = #tpu.pipeline_mode<synchronous>, transform_indices = @transform_4, window_bounds = array<i64: 256, 128>}, {pipeline_mode = #tpu.pipeline_mode<synchronous>, transform_indices = @transform_5, window_bounds = array<i64: 1, 128>}, {pipeline_mode = #tpu.pipeline_mode<synchronous>, transform_indices = @transform_6, window_bounds = array<i64: 128, 128>}, {pipeline_mode = #tpu.pipeline_mode<synchronous>, transform_indices = @transform_7, window_bounds = array<i64: 1, 128>}, {pipeline_mode = #tpu.pipeline_mode<synchronous>, transform_indices = @transform_8, window_bounds = array<i64: 128, 128>}, {pipeline_mode = #tpu.pipeline_mode<synchronous>, transform_indices = @transform_9, window_bounds = array<i64: 1, 128>}, {pipeline_mode = #tpu.pipeline_mode<synchronous>, transform_indices = @transform_10, window_bounds = array<i64: 128, 128>}, {pipeline_mode = #tpu.pipeline_mode<synchronous>, transform_indices = @transform_11, window_bounds = array<i64: 1, 128>}, {transform_indices = @transform_12, window_bounds = array<i64: 8, 128>}]} {
    %c0 = arith.constant 0 : index
    %c0_0 = arith.constant 0 : index
    %0 = vector.load %arg1[%c0, %c0_0] : memref<8x128xf32, #tpu.memory_space<vmem>>, vector<8x128xf32>
    %c0_1 = arith.constant 0 : index
    %c0_2 = arith.constant 0 : index
    %1 = vector.load %arg2[%c0_1, %c0_2] : memref<128x384xf32, #tpu.memory_space<vmem>>, vector<128x384xf32>
    %cst = arith.constant dense<0.000000e+00> : vector<8x384xf32>
    %2 = tpu.matmul %0, %1, %cst {dimension_numbers = #tpu.dot_dimension_numbers<[1], [0], [0], [1], [0, 0, 1, 1], [], []>} : vector<8x128xf32>, vector<128x384xf32>, vector<8x384xf32> -> vector<8x384xf32>
    %c0_3 = arith.constant 0 : index
    %c0_4 = arith.constant 0 : index
    %3 = vector.load %arg3[%c0_3, %c0_4] : memref<1x384xf32, #tpu.memory_space<vmem>>, vector<1x384xf32>
    %4 = vector.broadcast %3 : vector<1x384xf32> to vector<8x384xf32>
    %5 = arith.addf %2, %4 : vector<8x384xf32>
    %6 = vector.extract_strided_slice %5 {offsets = [0, 0], sizes = [8, 128], strides = [1, 1]} : vector<8x384xf32> to vector<8x128xf32>
    %7 = math.tanh %6 : vector<8x128xf32>
    %8 = vector.extract_strided_slice %5 {offsets = [0, 128], sizes = [8, 256], strides = [1, 1]} : vector<8x384xf32> to vector<8x256xf32>
    %cst_5 = arith.constant 0.000000e+00 : f32
    %9 = vector.broadcast %cst_5 : f32 to vector<8x256xf32>
    %10 = arith.maximumf %8, %9 : vector<8x256xf32>
    %c0_6 = arith.constant 0 : index
    %c0_7 = arith.constant 0 : index
    %11 = vector.load %arg4[%c0_6, %c0_7] : memref<128x128xf32, #tpu.memory_space<vmem>>, vector<128x128xf32>
    %cst_8 = arith.constant dense<0.000000e+00> : vector<8x128xf32>
    %12 = tpu.matmul %7, %11, %cst_8 {dimension_numbers = #tpu.dot_dimension_numbers<[1], [0], [0], [1], [0, 0, 1, 1], [], []>} : vector<8x128xf32>, vector<128x128xf32>, vector<8x128xf32> -> vector<8x128xf32>
    %c0_9 = arith.constant 0 : index
    %c0_10 = arith.constant 0 : index
    %13 = vector.load %arg5[%c0_9, %c0_10] : memref<256x128xf32, #tpu.memory_space<vmem>>, vector<256x128xf32>
    %cst_11 = arith.constant dense<0.000000e+00> : vector<8x128xf32>
    %14 = tpu.matmul %10, %13, %cst_11 {dimension_numbers = #tpu.dot_dimension_numbers<[1], [0], [0], [1], [0, 0, 1, 1], [], []>} : vector<8x256xf32>, vector<256x128xf32>, vector<8x128xf32> -> vector<8x128xf32>
    %15 = arith.addf %12, %14 : vector<8x128xf32>
    %c0_12 = arith.constant 0 : index
    %c0_13 = arith.constant 0 : index
    %16 = vector.load %arg6[%c0_12, %c0_13] : memref<1x128xf32, #tpu.memory_space<vmem>>, vector<1x128xf32>
    %17 = vector.broadcast %16 : vector<1x128xf32> to vector<8x128xf32>
    %18 = arith.addf %15, %17 : vector<8x128xf32>
    %19 = math.tanh %18 : vector<8x128xf32>
    %c0_14 = arith.constant 0 : index
    %c0_15 = arith.constant 0 : index
    %20 = vector.load %arg7[%c0_14, %c0_15] : memref<128x128xf32, #tpu.memory_space<vmem>>, vector<128x128xf32>
    %cst_16 = arith.constant dense<0.000000e+00> : vector<8x128xf32>
    %21 = tpu.matmul %19, %20, %cst_16 {dimension_numbers = #tpu.dot_dimension_numbers<[1], [0], [0], [1], [0, 0, 1, 1], [], []>} : vector<8x128xf32>, vector<128x128xf32>, vector<8x128xf32> -> vector<8x128xf32>
    %c0_17 = arith.constant 0 : index
    %c0_18 = arith.constant 0 : index
    %22 = vector.load %arg8[%c0_17, %c0_18] : memref<1x128xf32, #tpu.memory_space<vmem>>, vector<1x128xf32>
    %23 = vector.broadcast %22 : vector<1x128xf32> to vector<8x128xf32>
    %24 = arith.addf %21, %23 : vector<8x128xf32>
    %25 = math.tanh %24 : vector<8x128xf32>
    %c0_19 = arith.constant 0 : index
    %c0_20 = arith.constant 0 : index
    %26 = vector.load %arg9[%c0_19, %c0_20] : memref<128x128xf32, #tpu.memory_space<vmem>>, vector<128x128xf32>
    %cst_21 = arith.constant dense<0.000000e+00> : vector<8x128xf32>
    %27 = tpu.matmul %25, %26, %cst_21 {dimension_numbers = #tpu.dot_dimension_numbers<[1], [0], [0], [1], [0, 0, 1, 1], [], []>} : vector<8x128xf32>, vector<128x128xf32>, vector<8x128xf32> -> vector<8x128xf32>
    %c0_22 = arith.constant 0 : index
    %c0_23 = arith.constant 0 : index
    %28 = vector.load %arg10[%c0_22, %c0_23] : memref<1x128xf32, #tpu.memory_space<vmem>>, vector<1x128xf32>
    %29 = vector.broadcast %28 : vector<1x128xf32> to vector<8x128xf32>
    %30 = arith.addf %27, %29 : vector<8x128xf32>
    %31 = math.tanh %30 : vector<8x128xf32>
    %c0_24 = arith.constant 0 : index
    %c0_25 = arith.constant 0 : index
    %32 = vector.load %arg11[%c0_24, %c0_25] : memref<128x128xf32, #tpu.memory_space<vmem>>, vector<128x128xf32>
    %cst_26 = arith.constant dense<0.000000e+00> : vector<8x128xf32>
    %33 = tpu.matmul %31, %32, %cst_26 {dimension_numbers = #tpu.dot_dimension_numbers<[1], [0], [0], [1], [0, 0, 1, 1], [], []>} : vector<8x128xf32>, vector<128x128xf32>, vector<8x128xf32> -> vector<8x128xf32>
    %c0_27 = arith.constant 0 : index
    %c0_28 = arith.constant 0 : index
    %34 = vector.load %arg12[%c0_27, %c0_28] : memref<1x128xf32, #tpu.memory_space<vmem>>, vector<1x128xf32>
    %35 = vector.broadcast %34 : vector<1x128xf32> to vector<8x128xf32>
    %36 = arith.addf %33, %35 : vector<8x128xf32>
    %c0_29 = arith.constant 0 : index
    %c0_30 = arith.constant 0 : index
    %37 = vector.load %arg13[%c0_29, %c0_30] : memref<8x128xf32, #tpu.memory_space<vmem>>, vector<8x128xf32>
    tpu.vector_store %arg13[%c0_29, %c0_30], %36 {strides = array<i32>} : memref<8x128xf32, #tpu.memory_space<vmem>>, vector<8x128xf32>,
    return
  }
  func.func @transform_0(%arg0: i32) -> (i32, i32) {
    %c0_i32 = arith.constant 0 : i32
    %c0_i32_0 = arith.constant 0 : i32
    return %arg0, %c0_i32 : i32, i32
  }
  func.func @transform_1(%arg0: i32) -> (i32, i32) {
    %c0_i32 = arith.constant 0 : i32
    %c0_i32_0 = arith.constant 0 : i32
    %c0_i32_1 = arith.constant 0 : i32
    return %c0_i32, %c0_i32_0 : i32, i32
  }
  func.func @transform_2(%arg0: i32) -> (i32, i32) {
    %c0_i32 = arith.constant 0 : i32
    %c0_i32_0 = arith.constant 0 : i32
    %c0_i32_1 = arith.constant 0 : i32
    return %c0_i32, %c0_i32_0 : i32, i32
  }
  func.func @transform_3(%arg0: i32) -> (i32, i32) {
    %c0_i32 = arith.constant 0 : i32
    %c0_i32_0 = arith.constant 0 : i32
    %c0_i32_1 = arith.constant 0 : i32
    return %c0_i32, %c0_i32_0 : i32, i32
  }
  func.func @transform_4(%arg0: i32) -> (i32, i32) {
    %c0_i32 = arith.constant 0 : i32
    %c0_i32_0 = arith.constant 0 : i32
    %c0_i32_1 = arith.constant 0 : i32
    return %c0_i32, %c0_i32_0 : i32, i32
  }
  func.func @transform_5(%arg0: i32) -> (i32, i32) {
    %c0_i32 = arith.constant 0 : i32
    %c0_i32_0 = arith.constant 0 : i32
    %c0_i32_1 = arith.constant 0 : i32
    return %c0_i32, %c0_i32_0 : i32, i32
  }
  func.func @transform_6(%arg0: i32) -> (i32, i32) {
    %c0_i32 = arith.constant 0 : i32
    %c0_i32_0 = arith.constant 0 : i32
    %c0_i32_1 = arith.constant 0 : i32
    return %c0_i32, %c0_i32_0 : i32, i32
  }
  func.func @transform_7(%arg0: i32) -> (i32, i32) {
    %c0_i32 = arith.constant 0 : i32
    %c0_i32_0 = arith.constant 0 : i32
    %c0_i32_1 = arith.constant 0 : i32
    return %c0_i32, %c0_i32_0 : i32, i32
  }
  func.func @transform_8(%arg0: i32) -> (i32, i32) {
    %c0_i32 = arith.constant 0 : i32
    %c0_i32_0 = arith.constant 0 : i32
    %c0_i32_1 = arith.constant 0 : i32
    return %c0_i32, %c0_i32_0 : i32, i32
  }
  func.func @transform_9(%arg0: i32) -> (i32, i32) {
    %c0_i32 = arith.constant 0 : i32
    %c0_i32_0 = arith.constant 0 : i32
    %c0_i32_1 = arith.constant 0 : i32
    return %c0_i32, %c0_i32_0 : i32, i32
  }
  func.func @transform_10(%arg0: i32) -> (i32, i32) {
    %c0_i32 = arith.constant 0 : i32
    %c0_i32_0 = arith.constant 0 : i32
    %c0_i32_1 = arith.constant 0 : i32
    return %c0_i32, %c0_i32_0 : i32, i32
  }
  func.func @transform_11(%arg0: i32) -> (i32, i32) {
    %c0_i32 = arith.constant 0 : i32
    %c0_i32_0 = arith.constant 0 : i32
    %c0_i32_1 = arith.constant 0 : i32
    return %c0_i32, %c0_i32_0 : i32, i32
  }
  func.func @transform_12(%arg0: i32) -> (i32, i32) {
    %c0_i32 = arith.constant 0 : i32
    %c0_i32_0 = arith.constant 0 : i32
    return %arg0, %c0_i32 : i32, i32
  }
}

</mosaic_0001>

<bundles_post_ra>
// kernel: net_forward.1
= control target key start
LH: loop header
LB: loop body
LE: loop exit
PB: predicated region body
PF: predicated region fallthrough
CT: control target
= control target key end

     0   :  { %17 = vsyncpa [#allocation3], 0  ;;  %s1802_s0 = inlined_call_operand.vmem [shape: f32[8,128], index: 0, kind: input, shape index: {}]   ;;  %s1803_s1 = inlined_call_operand.vmem [shape: f32[128,384], index: 1, kind: input, shape index: {}]   ;;  %s1804_s2 = inlined_call_operand.vmem [shape: f32[1,384], index: 2, kind: input, shape index: {}]   ;;  %s1805_s3 = inlined_call_operand.hbm [shape: f32[128,128], index: 3, kind: input, shape index: {}]   ;;  %s1806_s4 = inlined_call_operand.hbm [shape: f32[256,128], index: 4, kind: input, shape index: {}]   ;;  %s1807_s5 = inlined_call_operand.vmem [shape: f32[1,128], index: 5, kind: input, shape index: {}]   ;;  %s1808_s6 = inlined_call_operand.hbm [shape: f32[128,128], index: 6, kind: input, shape index: {}]   ;;  %s1809_s7 = inlined_call_operand.vmem [shape: f32[1,128], index: 7, kind: input, shape index: {}]   ;;  %s1810_s8 = inlined_call_operand.hbm [shape: f32[128,128], index: 8, kind: input, shape index: {}]   ;;  %s1811_s9 = inlined_call_operand.vmem [shape: f32[1,128], index: 9, kind: input, shape index: {}]   ;;  %s1812_s10 = inlined_call_operand.hbm [shape: f32[128,128], index: 10, kind: input, shape index: {}]   ;;  %s1813_s11 = inlined_call_operand.vmem [shape: f32[1,128], index: 11, kind: input, shape index: {}]   ;;  %s1814_s12 = inlined_call_operand.vmem [shape: f32[8,128], index: 12, kind: output, shape index: {}]  }
   0x1   :  { %18 = vsyncpa [#allocation5], 0 }
   0x2   :  { %19 = vsyncpa [#allocation8], 0  ;;  %s1422_s21 = smov [#allocation4]   ;;  %s1423_s23 = smov [#allocation7]  }
   0x3   :  { %s43_s22 = sshll.u32 %s1422_s21, 4  ;;  %s71_s24 = sshll.u32 %s1423_s23, 4  ;;  %s44_s22 = int_to_ptr.vmem [resolvable:$true] %s43_s22  ;;  %s1497_s24 = int_to_ptr.vmem [resolvable:$true] %s71_s24 }
   0x4   :  { %s1306_s27 = scalar_lea.hbm %s1806_s4, 4096 }
   0x5   :  { %p1307_p0 = scmp.ne.s32.totalorder %s1806_s4, %s1306_s27  ;;  %p1310_p1 = scmp.lt.u32.totalorder %s1306_s27, %s1806_s4 }
   0x7   :  { %p1312_p2 = pnand %p1310_p1, %p1307_p0 }
   0x9   :  { %1315 = shalt.err (!%p1312_p2)
}
   0xa   :  { %s1316_s14 = scalar_lea.vmem %s44_s22, 4096  ;;  %p1321_p4 = scmp.lt.s32.totalorder %s44_s22, %s44_s22 }
   0xb   :  { %p1317_p3 = scmp.ne.s32.totalorder %s44_s22, %s1316_s14  ;;  %p1322_p5 = scmp.lt.s32.totalorder %s1316_s14, %s1316_s14 }
   0xd   :  { %p1323_p6 = por %p1322_p5, %p1321_p4 }
   0xf   :  { %p1324_p7 = pnand %p1323_p6, %p1317_p3 }
  0x11   :  { %1327 = shalt.err (!%p1324_p7)
}
  0x12   :  { %s1424_s15 = smov 128   ;;  %s1425_s16 = smov 8  }
  0x13   :  { %49 = dma.hbm_to_vmem [thread:$0]  %s1806_s4, 4096, %s44_s22, [#allocation5], %s1424_s15, %s1424_s15, %s1425_s16  }
  0x14   :  { %s1328_s21 = scalar_lea.hbm %s1810_s8, 2048 }
  0x15   :  { %p1329_p8 = scmp.ne.s32.totalorder %s1810_s8, %s1328_s21  ;;  %p1332_p9 = scmp.lt.u32.totalorder %s1328_s21, %s1810_s8 }
  0x17   :  { %p1334_p10 = pnand %p1332_p9, %p1329_p8 }
  0x19   :  { %1337 = shalt.err (!%p1334_p10)
}
  0x1a   :  { %s1338_s28 = scalar_lea.vmem %s1497_s24, 2048  ;;  %p1343_p12 = scmp.lt.s32.totalorder %s1497_s24, %s1497_s24 }
  0x1b   :  { %p1339_p11 = scmp.ne.s32.totalorder %s1497_s24, %s1338_s28  ;;  %p1344_p13 = scmp.lt.s32.totalorder %s1338_s28, %s1338_s28 }
  0x1d   :  { %p1345_p0 = por %p1344_p13, %p1343_p12 }
  0x1f   :  { %p1346_p1 = pnand %p1345_p0, %p1339_p11 }
  0x21   :  { %1349 = shalt.err (!%p1346_p1)
}
  0x22   :  { %77 = dma.hbm_to_vmem [thread:$0]  %s1810_s8, 2048, %s1497_s24, [#allocation8], %s1424_s15, %s1424_s15, %s1425_s16  }
  0x23   :  { %s1426_s29 = smov [#allocation2]   ;;  %s1427_s13 = smov [#allocation6]  }
  0x24   :  { %s31_s30 = sshll.u32 %s1426_s29, 4  ;;  %s57_s14 = sshll.u32 %s1427_s13, 4  ;;  %s32_s30 = int_to_ptr.vmem [resolvable:$true] %s31_s30  ;;  %s1534_s14 = int_to_ptr.vmem [resolvable:$true] %s57_s14 }
  0x25   :  { %s1350_s19 = scalar_lea.hbm %s1805_s3, 2048 }
  0x26   :  { %p1351_p2 = scmp.ne.s32.totalorder %s1805_s3, %s1350_s19  ;;  %p1354_p3 = scmp.lt.u32.totalorder %s1350_s19, %s1805_s3 }
  0x28   :  { %p1356_p4 = pnand %p1354_p3, %p1351_p2 }
  0x2a   :  { %1359 = shalt.err (!%p1356_p4)
}
  0x2b   :  { %s1360_s8 = scalar_lea.vmem %s32_s30, 2048  ;;  %p1365_p6 = scmp.lt.s32.totalorder %s32_s30, %s32_s30 }
  0x2c   :  { %p1361_p5 = scmp.ne.s32.totalorder %s32_s30, %s1360_s8  ;;  %p1366_p7 = scmp.lt.s32.totalorder %s1360_s8, %s1360_s8 }
  0x2e   :  { %p1367_p8 = por %p1366_p7, %p1365_p6 }
  0x30   :  { %p1368_p9 = pnand %p1367_p8, %p1361_p5 }
  0x32   :  { %1371 = shalt.err (!%p1368_p9)
}
  0x33   :  { %37 = dma.hbm_to_vmem [thread:$0]  %s1805_s3, 2048, %s32_s30, [#allocation3], %s1424_s15, %s1424_s15, %s1425_s16  }
  0x34   :  { %s1372_s4 = scalar_lea.hbm %s1808_s6, 2048 }
  0x35   :  { %p1373_p10 = scmp.ne.s32.totalorder %s1808_s6, %s1372_s4  ;;  %p1376_p11 = scmp.lt.u32.totalorder %s1372_s4, %s1808_s6 }
  0x37   :  { %p1378_p12 = pnand %p1376_p11, %p1373_p10 }
  0x39   :  { %1381 = shalt.err (!%p1378_p12)
}
  0x3a   :  { %s1382_s18 = scalar_lea.vmem %s1534_s14, 2048  ;;  %p1387_p0 = scmp.lt.s32.totalorder %s1534_s14, %s1534_s14 }
  0x3b   :  { %p1383_p13 = scmp.ne.s32.totalorder %s1534_s14, %s1382_s18  ;;  %p1388_p1 = scmp.lt.s32.totalorder %s1382_s18, %s1382_s18 }
  0x3d   :  { %p1389_p2 = por %p1388_p1, %p1387_p0 }
  0x3f   :  { %p1390_p3 = pnand %p1389_p2, %p1383_p13 }
  0x41   :  { %1393 = shalt.err (!%p1390_p3)
}
  0x42   :  { %63 = dma.hbm_to_vmem [thread:$0]  %s1808_s6, 2048, %s1534_s14, [#allocation5], %s1424_s15, %s1424_s15, %s1425_s16  }
  0x43   :  { %s1428_s19 = smov [#allocation9]   ;;  %s1394_s25 = scalar_lea.hbm %s1812_s10, 2048 }
  0x44   :  { %s85_s20 = sshll.u32 %s1428_s19, 4  ;;  %p1395_p4 = scmp.ne.s32.totalorder %s1812_s10, %s1394_s25  ;;  %s86_s20 = int_to_ptr.vmem [resolvable:$true] %s85_s20 }
  0x45   :  { %p1398_p5 = scmp.lt.u32.totalorder %s1394_s25, %s1812_s10 }
  0x47   :  { %p1400_p6 = pnand %p1398_p5, %p1395_p4 }
  0x49   :  { %1403 = shalt.err (!%p1400_p6)
}
  0x4a   :  { %s1404_s28 = scalar_lea.vmem %s86_s20, 2048  ;;  %p1409_p8 = scmp.lt.s32.totalorder %s86_s20, %s86_s20 }
  0x4b   :  { %p1405_p7 = scmp.ne.s32.totalorder %s86_s20, %s1404_s28  ;;  %p1410_p9 = scmp.lt.s32.totalorder %s1404_s28, %s1404_s28 }
  0x4d   :  { %p1411_p10 = por %p1410_p9, %p1409_p8 }
  0x4f   :  { %p1412_p11 = pnand %p1411_p10, %p1405_p7 }
  0x51   :  { %1415 = shalt.err (!%p1412_p11)
}
  0x52   :  { %91 = dma.hbm_to_vmem [thread:$0]  %s1812_s10, 2048, %s86_s20, [#allocation8], %s1424_s15, %s1424_s15, %s1425_s16  }
  0x53   :  { %1416 = dma.done.wait [#allocation3], 2048  }
  0x54   :  { %1417 = vsyncadd [#allocation3], 4294965248 }
  0x55   :  { %1418 = dma.done.wait [#allocation5], 6144  }
  0x56   :  { %1419 = vsyncadd [#allocation5], 4294961152 }
  0x57   :  { %1420 = dma.done.wait [#allocation8], 4096  }
  0x58   :  { %1421 = vsyncadd [#allocation8], 4294963200  ;;  %v1429_v0 = vmov 0.0|0.0   ;;  %v1430_v1 = vmov 0.0   ;;  %vm1431_vm0 = vmmov 0   ;;  %v111_v2 = vld [vmem:[%s1803_s1 + $0x8] sm:$0xff] }
  0x59   :  { %1136 = vmatprep.subr.bf16.mxu1 %v1429_v0  ;;  %239 = vmatprep.mubr.f32.mxu0 %v1430_v1  ;;  %v114_v3 = vld [vmem:[%s1803_s1 + $0x20] sm:$0xff]  ;;  %v113_v6 = vld [vmem:[%s1803_s1 + $0x18] sm:$0xff]  ;;  %v112_v7 = vld [vmem:[%s1803_s1 + $0x10] sm:$0xff] }
  0x5a   :  { %961 = vmatprep.mubr.msk.f32.mxu1 %vm1431_vm0, %v1430_v1  ;;  %v110_v4 = vld [vmem:[%s1803_s1] sm:$0xff]  ;;  %v1104_v5 = vpack.c.bf16 %v114_v3, %v111_v2  ;;  %v115_v8 = vld [vmem:[%s1803_s1 + $0x28] sm:$0xff]  ;;  %v117_v11 = vld [vmem:[%s1803_s1 + $0x38] sm:$0xff] }
  0x5b   :  { %v1106_v9 = vpack.c.bf16 %v113_v6, %v110_v4  ;;  %v1137_v10 = vpack.c.bf16 %v115_v8, %v112_v7  ;;  %v120_v12 = vld [vmem:[%s1803_s1 + $0x50] sm:$0xff]  ;;  %v119_v15 = vld [vmem:[%s1803_s1 + $0x48] sm:$0xff]  ;;  %v118_v16 = vld [vmem:[%s1803_s1 + $0x40] sm:$0xff] }
  0x5c   :  { %v116_v13 = vld [vmem:[%s1803_s1 + $0x30] sm:$0xff]  ;;  %1105 = vmatprep.subr.bf16.mxu0 %v1104_v5  ;;  %v1108_v14 = vpack.c.bf16 %v120_v12, %v117_v11  ;;  %v121_v17 = vld [vmem:[%s1803_s1 + $0x58] sm:$0xff]  ;;  %v123_v20 = vld [vmem:[%s1803_s1 + $0x68] sm:$0xff] }
  0x5d   :  { %1107 = vmatpush1.bf16.msra.mxu0 %v1106_v9  ;;  %1138 = vmatpush3.bf16.msra.mxu1 %v1137_v10  ;;  %v1110_v18 = vpack.c.bf16 %v119_v15, %v116_v13  ;;  %v1140_v19 = vpack.c.bf16 %v121_v17, %v118_v16  ;;  %v126_v21 = vld [vmem:[%s1803_s1 + $0x80] sm:$0xff]  ;;  %v125_v24 = vld [vmem:[%s1803_s1 + $0x78] sm:$0xff]  ;;  %v124_v25 = vld [vmem:[%s1803_s1 + $0x70] sm:$0xff] }
  0x5e   :  { %v122_v22 = vld [vmem:[%s1803_s1 + $0x60] sm:$0xff]  ;;  %1109 = vmatprep.subr.bf16.mxu0 %v1108_v14  ;;  %1139 = vmatprep.subr.bf16.mxu1 %v1429_v0  ;;  %v1112_v23 = vpack.c.bf16 %v126_v21, %v123_v20  ;;  %v127_v26 = vld [vmem:[%s1803_s1 + $0x88] sm:$0xff]  ;;  %v129_v27 = vld [vmem:[%s1803_s1 + $0x98] sm:$0xff] }
  0x5f   :  { %v132_v28 = vld [vmem:[%s1803_s1 + $0xb0] sm:$0xff]  ;;  %v1114_v29 = vpack.c.bf16 %v125_v24, %v122_v22  ;;  %v1143_v30 = vpack.c.bf16 %v127_v26, %v124_v25  ;;  %v131_v33 = vld [vmem:[%s1803_s1 + $0xa8] sm:$0xff]  ;;  %v130_v34 = vld [vmem:[%s1803_s1 + $0xa0] sm:$0xff] }
  0x60   :  { %v128_v31 = vld [vmem:[%s1803_s1 + $0x90] sm:$0xff]  ;;  %v1116_v32 = vpack.c.bf16 %v132_v28, %v129_v27  ;;  %v133_v35 = vld [vmem:[%s1803_s1 + $0xb8] sm:$0xff]  ;;  %v135_v36 = vld [vmem:[%s1803_s1 + $0xc8] sm:$0xff] }
  0x61   :  { %1111 = vmatpush1.bf16.msra.mxu0 %v1110_v18  ;;  %1141 = vmatpush3.bf16.msra.mxu1 %v1140_v19  ;;  %v138_v37 = vld [vmem:[%s1803_s1 + $0xe0] sm:$0xff]  ;;  %v1118_v38 = vpack.c.bf16 %v131_v33, %v128_v31  ;;  %v1146_v39 = vpack.c.bf16 %v133_v35, %v130_v34  ;;  %v137_v42 = vld [vmem:[%s1803_s1 + $0xd8] sm:$0xff]  ;;  %v136_v43 = vld [vmem:[%s1803_s1 + $0xd0] sm:$0xff] }
  0x62   :  { %1113 = vmatprep.subr.bf16.mxu0 %v1112_v23  ;;  %1142 = vmatprep.subr.bf16.mxu1 %v1429_v0  ;;  %v134_v40 = vld [vmem:[%s1803_s1 + $0xc0] sm:$0xff]  ;;  %v1120_v41 = vpack.c.bf16 %v138_v37, %v135_v36  ;;  %v139_v44 = vld [vmem:[%s1803_s1 + $0xe8] sm:$0xff]  ;;  %v141_v45 = vld [vmem:[%s1803_s1 + $0xf8] sm:$0xff] }
  0x63   :  { %v144_v46 = vld [vmem:[%s1803_s1 + $0x110] sm:$0xff]  ;;  %v1122_v47 = vpack.c.bf16 %v137_v42, %v134_v40  ;;  %v1149_v48 = vpack.c.bf16 %v139_v44, %v136_v43  ;;  %v143_v51 = vld [vmem:[%s1803_s1 + $0x108] sm:$0xff]  ;;  %v142_v52 = vld [vmem:[%s1803_s1 + $0x100] sm:$0xff] }
  0x64   :  { %v140_v49 = vld [vmem:[%s1803_s1 + $0xf0] sm:$0xff]  ;;  %v1124_v50 = vpack.c.bf16 %v144_v46, %v141_v45  ;;  %v145_v53 = vld [vmem:[%s1803_s1 + $0x118] sm:$0xff]  ;;  %v147_v54 = vld [vmem:[%s1803_s1 + $0x128] sm:$0xff] }
  0x65   :  { %1115 = vmatpush1.bf16.msra.mxu0 %v1114_v29  ;;  %1144 = vmatpush3.bf16.msra.mxu1 %v1143_v30  ;;  %v150_v55 = vld [vmem:[%s1803_s1 + $0x140] sm:$0xff]  ;;  %v1126_v56 = vpack.c.bf16 %v143_v51, %v140_v49  ;;  %v1152_v57 = vpack.c.bf16 %v145_v53, %v142_v52  ;;  %v149_v60 = vld [vmem:[%s1803_s1 + $0x138] sm:$0xff]  ;;  %v148_v61 = vld [vmem:[%s1803_s1 + $0x130] sm:$0xff] }
  0x66   :  { %1117 = vmatprep.subr.bf16.mxu0 %v1116_v32  ;;  %1145 = vmatprep.subr.bf16.mxu1 %v1429_v0  ;;  %v146_v58 = vld [vmem:[%s1803_s1 + $0x120] sm:$0xff]  ;;  %v1128_v59 = vpack.c.bf16 %v150_v55, %v147_v54  ;;  %v151_v62 = vld [vmem:[%s1803_s1 + $0x148] sm:$0xff]  ;;  %v153_v63 = vld [vmem:[%s1803_s1 + $0x158] sm:$0xff] }
  0x67   :  { %v156_v2 = vld [vmem:[%s1803_s1 + $0x170] sm:$0xff]  ;;  %v1130_v3 = vpack.c.bf16 %v149_v60, %v146_v58  ;;  %v1155_v4 = vpack.c.bf16 %v151_v62, %v148_v61  ;;  %v155_v7 = vld [vmem:[%s1803_s1 + $0x168] sm:$0xff]  ;;  %v154_v8 = vld [vmem:[%s1803_s1 + $0x160] sm:$0xff] }
  0x68   :  { %v152_v5 = vld [vmem:[%s1803_s1 + $0x150] sm:$0xff]  ;;  %v1132_v6 = vpack.c.bf16 %v156_v2, %v153_v63  ;;  %v157_v9 = vld [vmem:[%s1803_s1 + $0x178] sm:$0xff]  ;;  %v351_v10 = vld [vmem:[#allocation4 + $0x80] sm:$0xff] }
  0x69   :  { %1119 = vmatpush1.bf16.msra.mxu0 %v1118_v38  ;;  %1147 = vmatpush3.bf16.msra.mxu1 %v1146_v39  ;;  %v352_v11 = vld [vmem:[#allocation4 + $0x88] sm:$0xff]  ;;  %v1134_v12 = vpack.c.bf16 %v155_v7, %v152_v5  ;;  %v1158_v13 = vpack.c.bf16 %v157_v9, %v154_v8  ;;  %v335_v14 = vld [vmem:[#allocation4] sm:$0xff]  ;;  %v353_v19 = vld [vmem:[#allocation4 + $0x90] sm:$0xff] }
  0x6a   :  { %1121 = vmatprep.subr.bf16.mxu0 %v1120_v41  ;;  %1148 = vmatprep.subr.bf16.mxu1 %v1429_v0  ;;  %v1160_v15 = vpack.c.bf16 %v352_v11, %v351_v10  ;;  %v336_v16 = vld [vmem:[#allocation4 + $0x8] sm:$0xff]  ;;  %v319_v17 = vld [vmem:[#allocation2] sm:$0xff]  ;;  %v354_v20 = vld [vmem:[#allocation4 + $0x98] sm:$0xff] }
  0x6b   :  { %v320_v18 = vld [vmem:[#allocation2 + $0x8] sm:$0xff]  ;;  %v109_v21 = vld [vmem:[%s1802_s0] sm:$0xff]  ;;  %v1162_v22 = vpack.c.bf16 %v336_v16, %v335_v14  ;;  %v337_v23 = vld [vmem:[#allocation4 + $0x10] sm:$0xff]  ;;  %v1164_v25 = vpack.c.bf16 %v354_v20, %v353_v19 }
  0x6c   :  { %v1193_v24 = vpack.c.bf16 %v320_v18, %v319_v17  ;;  %v338_v26 = vld [vmem:[#allocation4 + $0x18] sm:$0xff]  ;;  %v321_v27 = vld [vmem:[#allocation2 + $0x10] sm:$0xff]  ;;  %v355_v29 = vld [vmem:[#allocation4 + $0xa0] sm:$0xff] }
  0x6d   :  { %1123 = vmatpush1.bf16.msra.mxu0 %v1122_v47  ;;  %1150 = vmatpush3.bf16.msra.mxu1 %v1149_v48  ;;  %v322_v28 = vld [vmem:[#allocation2 + $0x18] sm:$0xff]  ;;  %v356_v30 = vld [vmem:[#allocation4 + $0xa8] sm:$0xff]  ;;  %v1166_v31 = vpack.c.bf16 %v338_v26, %v337_v23  ;;  %v339_v32 = vld [vmem:[#allocation4 + $0x20] sm:$0xff]  ;;  %v160_v23 = vlaneseq }
  0x6e   :  { %1125 = vmatprep.subr.bf16.mxu0 %v1124_v50  ;;  %1151 = vmatprep.subr.bf16.mxu1 %v1429_v0  ;;  %v1196_v33 = vpack.c.bf16 %v322_v28, %v321_v27  ;;  %v1168_v34 = vpack.c.bf16 %v356_v30, %v355_v29  ;;  %v340_v35 = vld [vmem:[#allocation4 + $0x28] sm:$0xff]  ;;  %v323_v36 = vld [vmem:[#allocation2 + $0x20] sm:$0xff]  ;;  %v357_v38 = vld [vmem:[#allocation4 + $0xb0] sm:$0xff] }
  0x6f   :  { %v324_v37 = vld [vmem:[#allocation2 + $0x28] sm:$0xff]  ;;  %v358_v39 = vld [vmem:[#allocation4 + $0xb8] sm:$0xff]  ;;  %v1170_v40 = vpack.c.bf16 %v340_v35, %v339_v32  ;;  %v341_v41 = vld [vmem:[#allocation4 + $0x30] sm:$0xff] }
  0x70   :  { %v1199_v42 = vpack.c.bf16 %v324_v37, %v323_v36  ;;  %v1172_v43 = vpack.c.bf16 %v358_v39, %v357_v38  ;;  %v342_v44 = vld [vmem:[#allocation4 + $0x38] sm:$0xff]  ;;  %v325_v45 = vld [vmem:[#allocation2 + $0x30] sm:$0xff]  ;;  %v359_v47 = vld [vmem:[#allocation4 + $0xc0] sm:$0xff] }
  0x71   :  { %1127 = vmatpush1.bf16.msra.mxu0 %v1126_v56  ;;  %1153 = vmatpush3.bf16.msra.mxu1 %v1152_v57  ;;  %v326_v46 = vld [vmem:[#allocation2 + $0x38] sm:$0xff]  ;;  %v360_v48 = vld [vmem:[#allocation4 + $0xc8] sm:$0xff]  ;;  %v1174_v49 = vpack.c.bf16 %v342_v44, %v341_v41  ;;  %v343_v50 = vld [vmem:[#allocation4 + $0x40] sm:$0xff] }
  0x72   :  { %1129 = vmatprep.subr.bf16.mxu0 %v1128_v59  ;;  %1154 = vmatprep.subr.bf16.mxu1 %v1429_v0  ;;  %v1202_v51 = vpack.c.bf16 %v326_v46, %v325_v45  ;;  %v1176_v52 = vpack.c.bf16 %v360_v48, %v359_v47  ;;  %v344_v53 = vld [vmem:[#allocation4 + $0x48] sm:$0xff]  ;;  %v327_v54 = vld [vmem:[#allocation2 + $0x40] sm:$0xff]  ;;  %v361_v56 = vld [vmem:[#allocation4 + $0xd0] sm:$0xff] }
  0x73   :  { %v328_v55 = vld [vmem:[#allocation2 + $0x48] sm:$0xff]  ;;  %v362_v57 = vld [vmem:[#allocation4 + $0xd8] sm:$0xff]  ;;  %v1178_v58 = vpack.c.bf16 %v344_v53, %v343_v50  ;;  %v345_v61 = vld [vmem:[#allocation4 + $0x50] sm:$0xff] }
  0x74   :  { %v1205_v59 = vpack.c.bf16 %v328_v55, %v327_v54  ;;  %v1180_v60 = vpack.c.bf16 %v362_v57, %v361_v56  ;;  %v346_v62 = vld [vmem:[#allocation4 + $0x58] sm:$0xff]  ;;  %v363_v63 = vld [vmem:[#allocation4 + $0xe0] sm:$0xff]  ;;  %v364_v2 = vld [vmem:[#allocation4 + $0xe8] sm:$0xff] }
  0x75   :  { %1131 = vmatpush1.bf16.msra.mxu0 %v1130_v3  ;;  %1156 = vmatpush3.bf16.msra.mxu1 %v1155_v4  ;;  %v1182_v3 = vpack.c.bf16 %v346_v62, %v345_v61  ;;  %v1184_v4 = vpack.c.bf16 %v364_v2, %v363_v63  ;;  %v347_v5 = vld [vmem:[#allocation4 + $0x60] sm:$0xff]  ;;  %v365_v8 = vld [vmem:[#allocation4 + $0xf0] sm:$0xff]  ;;  %v366_v9 = vld [vmem:[#allocation4 + $0xf8] sm:$0xff] }
  0x76   :  { %1133 = vmatprep.subr.bf16.mxu0 %v1132_v6  ;;  %1157 = vmatprep.subr.bf16.mxu1 %v1429_v0  ;;  %v348_v6 = vld [vmem:[#allocation4 + $0x68] sm:$0xff]  ;;  %v1188_v10 = vpack.c.bf16 %v366_v9, %v365_v8  ;;  %v349_v11 = vld [vmem:[#allocation4 + $0x70] sm:$0xff]  ;;  %v331_v17 = vld [vmem:[#allocation2 + $0x60] sm:$0xff] }
  0x77   :  { %v1186_v7 = vpack.c.bf16 %v348_v6, %v347_v5  ;;  %v332_v18 = vld [vmem:[#allocation2 + $0x68] sm:$0xff]  ;;  %v333_v20 = vld [vmem:[#allocation2 + $0x70] sm:$0xff]  ;;  %v158_v27 = vld [vmem:[%s1804_s2] sm:$0x7] }
  0x78   :  { %v1211_v19 = vpack.c.bf16 %v332_v18, %v331_v17  ;;  %v517_v35 = vld [vmem:[#allocation6 + $0x8] sm:$0xff]  ;;  %v518_v44 = vld [vmem:[#allocation6 + $0x10] sm:$0xff]  ;;  %v519_v45 = vld [vmem:[#allocation6 + $0x18] sm:$0xff] }
  0x79   :  { %1135 = vmatpush1.bf16.msra.mxu0 %v1134_v12  ;;  %1159 = vmatpush3.bf16.msra.mxu1 %v1158_v13  ;;  %v350_v12 = vld [vmem:[#allocation4 + $0x78] sm:$0xff]  ;;  %v329_v13 = vld [vmem:[#allocation2 + $0x50] sm:$0xff]  ;;  %v1220_v46 = vpack.c.bf16 %v519_v45, %v518_v44  ;;  %v520_v48 = vld [vmem:[#allocation6 + $0x20] sm:$0xff] }
  0x7a   :  { %1161 = vmatprep.subr.bf16.mxu0 %v1160_v15  ;;  %1192 = vmatprep.subr.bf16.mxu1 %v1429_v0  ;;  %v1190_v14 = vpack.c.bf16 %v350_v12, %v349_v11  ;;  %v330_v15 = vld [vmem:[#allocation2 + $0x58] sm:$0xff]  ;;  %v524_v54 = vld [vmem:[#allocation6 + $0x40] sm:$0xff]  ;;  %v525_v55 = vld [vmem:[#allocation6 + $0x48] sm:$0xff] }
  0x7b   :  { %v1208_v16 = vpack.c.bf16 %v330_v15, %v329_v13  ;;  %v1229_v56 = vpack.c.bf16 %v525_v55, %v524_v54  ;;  %v526_v57 = vld [vmem:[#allocation6 + $0x50] sm:$0xff]  ;;  %v529_v61 = vld [vmem:[#allocation6 + $0x68] sm:$0xff]  ;;  %v531_v2 = vld [vmem:[#allocation6 + $0x78] sm:$0xff] }
  0x7c   :  { %240 = vmatmul.mubr.f32.vlgmr.msra.gmra.mrb[0].mxu0 %v109_v21  ;;  %962 = vmatmul.mubr.f32.vlgmr.msra.gmra.mrb[0].mxu1 %v109_v21  ;;  %v334_v21 = vld [vmem:[#allocation2 + $0x78] sm:$0xff]  ;;  %v530_v63 = vld [vmem:[#allocation6 + $0x70] sm:$0xff]  ;;  %v611_v5 = vld [vmem:[#allocation7 + $0x8] sm:$0xff] }
  0x7d   :  { %1163 = vmatpush3.bf16.msra.mxu0 %v1162_v22  ;;  %1194 = vmatpush3.bf16.msra.mxu1 %v1193_v24  ;;  %v1214_v22 = vpack.c.bf16 %v334_v21, %v333_v20  ;;  %v161_v24 = vshrl.u32 %v160_v23, 7  ;;  %v612_v6 = vld [vmem:[#allocation7 + $0x10] sm:$0xff]  ;;  %v613_v8 = vld [vmem:[#allocation7 + $0x18] sm:$0xff]  ;;  %v615_v11 = vld [vmem:[#allocation7 + $0x28] sm:$0xff] }
  0x7e   :  { %1165 = vmatprep.subr.bf16.mxu0 %v1164_v25  ;;  %1195 = vmatprep.subr.bf16.mxu1 %v1429_v0  ;;  %v1244_v9 = vpack.c.bf16 %v613_v8, %v612_v6  ;;  %v616_v13 = vld [vmem:[#allocation7 + $0x30] sm:$0xff]  ;;  %v619_v17 = vld [vmem:[#allocation7 + $0x48] sm:$0xff]  ;;  %v805_v23 = vld [vmem:[%s1807_s5] ss:$0 sm:$0xff] }
  0x7f   :  { %996 = vmatprep.mubr.msk.f32.mxu1 %vm1431_vm0, %v1430_v1  ;;  %v162_v25 = vsub.s32 0, %v161_v24  ;;  %v170_v26 = vsub.s32 2, %v161_v24  ;;  %v166_v28 = vsub.s32 1, %v161_v24  ;;  %v710_v45 = vld [vmem:[#allocation9 + $0x30] sm:$0xff]  ;;  %v808_v8 = vld [vmem:[%s1813_s11] ss:$0 sm:$0xff] }
  0x81   :  { %1167 = vmatpush3.bf16.msra.mxu0 %v1166_v31  ;;  %1197 = vmatpush3.bf16.msra.mxu1 %v1196_v33  ;;  %v163_v29 = vrot.slane %v158_v27, %v162_v25  ;;  %v171_v30 = vrot.slane %v158_v27, %v170_v26  ;;  %v167_v31 = vrot.slane %v158_v27, %v166_v28  ;;  %v620_v28 = vld [vmem:[#allocation7 + $0x50] sm:$0xff] }
  0x82   :  { %1169 = vmatprep.subr.bf16.mxu0 %v1168_v34  ;;  %1198 = vmatprep.subr.bf16.mxu1 %v1429_v0  ;;  %v516_v34 = vld [vmem:[#allocation6] sm:$0xff] }
  0x85   :  { %1171 = vmatpush3.bf16.msra.mxu0 %v1170_v40  ;;  %1200 = vmatpush3.bf16.msra.mxu1 %v1199_v42  ;;  %v1217_v42 = vpack.c.bf16 %v517_v35, %v516_v34  ;;  %v624_v34 = vld [vmem:[#allocation7 + $0x70] sm:$0xff]  ;;  %v625_v35 = vld [vmem:[#allocation7 + $0x78] sm:$0xff] }
  0x86   :  { %1173 = vmatprep.subr.bf16.mxu0 %v1172_v43  ;;  %1201 = vmatprep.subr.bf16.mxu1 %v1429_v0 }
  0x89   :  { %1175 = vmatpush3.bf16.msra.mxu0 %v1174_v49  ;;  %1203 = vmatpush3.bf16.msra.mxu1 %v1202_v51  ;;  %v521_v49 = vld [vmem:[#allocation6 + $0x28] sm:$0xff]  ;;  %v522_v51 = vld [vmem:[#allocation6 + $0x30] sm:$0xff] }
  0x8a   :  { %1177 = vmatprep.subr.bf16.mxu0 %v1176_v52  ;;  %1204 = vmatprep.subr.bf16.mxu1 %v1429_v0  ;;  %v1223_v50 = vpack.c.bf16 %v521_v49, %v520_v48  ;;  %v523_v52 = vld [vmem:[#allocation6 + $0x38] sm:$0xff]  ;;  %v712_v48 = vld [vmem:[#allocation9 + $0x40] sm:$0xff]  ;;  %v713_v49 = vld [vmem:[#allocation9 + $0x48] sm:$0xff] }
  0x8b   :  { %v1226_v53 = vpack.c.bf16 %v523_v52, %v522_v51  ;;  %v806_v51 = vld [vmem:[%s1809_s7] ss:$0 sm:$0xff] }
  0x8d   :  { %1179 = vmatpush3.bf16.msra.mxu0 %v1178_v58  ;;  %1206 = vmatpush3.bf16.msra.mxu1 %v1205_v59  ;;  %v527_v58 = vld [vmem:[#allocation6 + $0x58] sm:$0xff] }
  0x8e   :  { %1181 = vmatprep.subr.bf16.mxu0 %v1180_v60  ;;  %1207 = vmatprep.subr.bf16.mxu1 %v1429_v0  ;;  %v1232_v59 = vpack.c.bf16 %v527_v58, %v526_v57  ;;  %v528_v60 = vld [vmem:[#allocation6 + $0x60] sm:$0xff]  ;;  %v715_v57 = vld [vmem:[#allocation9 + $0x58] sm:$0xff] }
  0x8f   :  { %v1235_v62 = vpack.c.bf16 %v529_v61, %v528_v60  ;;  %v717_v60 = vld [vmem:[#allocation9 + $0x68] sm:$0xff] }
  0x91   :  { %1183 = vmatpush3.bf16.msra.mxu0 %v1182_v3  ;;  %1209 = vmatpush3.bf16.msra.mxu1 %v1208_v16  ;;  %v1238_v3 = vpack.c.bf16 %v531_v2, %v530_v63  ;;  %v618_v16 = vld [vmem:[#allocation7 + $0x40] sm:$0xff]  ;;  %v719_v63 = vld [vmem:[#allocation9 + $0x78] sm:$0xff] }
  0x92   :  { %1185 = vmatprep.subr.bf16.mxu0 %v1184_v4  ;;  %1210 = vmatprep.subr.bf16.mxu1 %v1429_v0  ;;  %v610_v4 = vld [vmem:[#allocation7] sm:$0xff]  ;;  %v1253_v18 = vpack.c.bf16 %v619_v17, %v618_v16 }
  0x95   :  { %1187 = vmatpush3.bf16.msra.mxu0 %v1186_v7  ;;  %1212 = vmatpush3.bf16.msra.mxu1 %v1211_v19  ;;  %v1241_v7 = vpack.c.bf16 %v611_v5, %v610_v4 }
  0x96   :  { %1189 = vmatprep.subr.bf16.mxu0 %v1188_v10  ;;  %1213 = vmatprep.subr.bf16.mxu1 %v1429_v0  ;;  %v614_v10 = vld [vmem:[#allocation7 + $0x20] sm:$0xff] }
  0x97   :  { %v1247_v12 = vpack.c.bf16 %v615_v11, %v614_v10 }
  0x99   :  { %1191 = vmatpush3.bf16.msra.mxu0 %v1190_v14  ;;  %1215 = vmatpush3.bf16.msra.mxu1 %v1214_v22  ;;  %v617_v14 = vld [vmem:[#allocation7 + $0x38] sm:$0xff] }
  0x9a   :  { %1216 = vmatprep.subr.bf16.mxu0 %v1429_v0  ;;  %1240 = vmatprep.subr.bf16.mxu1 %v1429_v0  ;;  %v1250_v15 = vpack.c.bf16 %v617_v14, %v616_v13 }
 0x14f   :  { %v241_v32 = vpop.f32.mrb[0].mxu0  ;;  %v312_v33 = vpop.f32.mrb[0].mxu1 }
 0x150   :  { %v242_v36 = vadd.f32 %v241_v32, %v163_v29  ;;  %v313_v37 = vadd.f32 %v312_v33, %v171_v30  ;;  %v243_v38 = vpop.f32.mrb[1].mxu0  ;;  %v963_v39 = vpop.f32.mrb[1].mxu1  ;;  %v621_v29 = vld [vmem:[#allocation7 + $0x58] sm:$0xff]  ;;  %v623_v32 = vld [vmem:[#allocation7 + $0x68] sm:$0xff] }
 0x151   :  { %v244_v40 = vadd.f32 %v243_v38, %v167_v31  ;;  %v1256_v30 = vpack.c.bf16 %v621_v29, %v620_v28  ;;  %v622_v31 = vld [vmem:[#allocation7 + $0x60] sm:$0xff]  ;;  %v705_v38 = vld [vmem:[#allocation9 + $0x8] sm:$0xff]  ;;  %v706_v39 = vld [vmem:[#allocation9 + $0x10] sm:$0xff] }
 0x152   :  { %1298 = vtanh.f32 %v242_v36  ;;  %v318_v41 = vmax.f32 %v313_v37, 0.0  ;;  %v1259_v33 = vpack.c.bf16 %v623_v32, %v622_v31  ;;  %v1262_v36 = vpack.c.bf16 %v625_v35, %v624_v34  ;;  %v704_v37 = vld [vmem:[#allocation9] sm:$0xff] }
 0x153   :  { %v317_v43 = vmax.f32 %v244_v40, 0.0  ;;  %v707_v40 = vld [vmem:[#allocation9 + $0x18] sm:$0xff] }
 0x154   :  { %431 = vmatprep.mubr.f32.mxu0 %v318_v41  ;;  %v1268_v41 = vpack.c.bf16 %v707_v40, %v706_v39 }
 0x155   :  { %432 = vmatmul.mubr.f32.vlgmr.msra.gmra.mrb[2].mxu0 %v317_v43  ;;  %v709_v43 = vld [vmem:[#allocation9 + $0x28] sm:$0xff] }
 0x156   :  { %1218 = vmatpush3.bf16.msra.mxu0 %v1217_v42  ;;  %1031 = vmatprep.mubr.msk.f32.mxu0 %vm1431_vm0, %v1430_v1  ;;  %v708_v42 = vld [vmem:[#allocation9 + $0x20] sm:$0xff] }
 0x157   :  { %1219 = vmatprep.subr.bf16.mxu0 %v1429_v0  ;;  %v1271_v44 = vpack.c.bf16 %v709_v43, %v708_v42 }
 0x15a   :  { %1221 = vmatpush3.bf16.msra.mxu0 %v1220_v46  ;;  %v711_v46 = vld [vmem:[#allocation9 + $0x38] sm:$0xff] }
 0x15b   :  { %1222 = vmatprep.subr.bf16.mxu0 %v1429_v0 }
 0x15c   :  { %v1299_v47 = vpop.eup %1298 }
 0x15d   :  { %997 = vmatmul.mubr.f32.vlgmr.msra.gmra.mrb[2].mxu1 %v1299_v47  ;;  %v1274_v47 = vpack.c.bf16 %v711_v46, %v710_v45 }
 0x15e   :  { %1066 = vmatprep.mubr.msk.f32.mxu1 %vm1431_vm0, %v1430_v1  ;;  %1224 = vmatpush3.bf16.msra.mxu0 %v1223_v50  ;;  %v1277_v50 = vpack.c.bf16 %v713_v49, %v712_v48 }
 0x15f   :  { %1225 = vmatprep.subr.bf16.mxu0 %v1429_v0  ;;  %1242 = vmatpush3.bf16.msra.mxu1 %v1241_v7 }
 0x160   :  { %1243 = vmatprep.subr.bf16.mxu1 %v1429_v0 }
 0x162   :  { %1227 = vmatpush3.bf16.msra.mxu0 %v1226_v53 }
 0x163   :  { %1228 = vmatprep.subr.bf16.mxu0 %v1429_v0  ;;  %1245 = vmatpush3.bf16.msra.mxu1 %v1244_v9 }
 0x164   :  { %1246 = vmatprep.subr.bf16.mxu1 %v1429_v0 }
 0x166   :  { %1230 = vmatpush3.bf16.msra.mxu0 %v1229_v56  ;;  %v714_v56 = vld [vmem:[#allocation9 + $0x50] sm:$0xff] }
 0x167   :  { %1231 = vmatprep.subr.bf16.mxu0 %v1429_v0  ;;  %1248 = vmatpush3.bf16.msra.mxu1 %v1247_v12  ;;  %v1280_v58 = vpack.c.bf16 %v715_v57, %v714_v56 }
 0x168   :  { %1249 = vmatprep.subr.bf16.mxu1 %v1429_v0 }
 0x16a   :  { %1233 = vmatpush3.bf16.msra.mxu0 %v1232_v59  ;;  %v716_v59 = vld [vmem:[#allocation9 + $0x60] sm:$0xff] }
 0x16b   :  { %1234 = vmatprep.subr.bf16.mxu0 %v1429_v0  ;;  %1251 = vmatpush3.bf16.msra.mxu1 %v1250_v15  ;;  %v1283_v61 = vpack.c.bf16 %v717_v60, %v716_v59 }
 0x16c   :  { %1252 = vmatprep.subr.bf16.mxu1 %v1429_v0 }
 0x16e   :  { %1236 = vmatpush3.bf16.msra.mxu0 %v1235_v62  ;;  %v718_v62 = vld [vmem:[#allocation9 + $0x70] sm:$0xff] }
 0x16f   :  { %1237 = vmatprep.subr.bf16.mxu0 %v1429_v0  ;;  %1254 = vmatpush3.bf16.msra.mxu1 %v1253_v18  ;;  %v1286_v2 = vpack.c.bf16 %v719_v63, %v718_v62 }
 0x170   :  { %1255 = vmatprep.subr.bf16.mxu1 %v1429_v0 }
 0x172   :  { %1239 = vmatpush3.bf16.msra.mxu0 %v1238_v3  ;;  %v807_v3 = vld [vmem:[%s1811_s9] ss:$0 sm:$0xff] }
 0x173   :  { %1264 = vmatprep.subr.bf16.mxu0 %v1429_v0  ;;  %1257 = vmatpush3.bf16.msra.mxu1 %v1256_v30 }
 0x174   :  { %1258 = vmatprep.subr.bf16.mxu1 %v1429_v0 }
 0x177   :  { %1260 = vmatpush3.bf16.msra.mxu1 %v1259_v33 }
 0x178   :  { %1261 = vmatprep.subr.bf16.mxu1 %v1429_v0 }
 0x17b   :  { %1263 = vmatpush3.bf16.msra.mxu1 %v1262_v36 }
 0x228   :  { %v858_v19 = vpop.f32.mrb[2].mxu0 }
 0x229   :  { %v859_v20 = vpop.f32.mrb[3].mxu0 }
 0x22a   :  { %v860_v21 = vadd.f32 %v859_v20, %v858_v19 }
 0x230   :  { %v503_v22 = vpop.f32.mrb[2].mxu1 }
 0x231   :  { %v504_v24 = vadd.f32 %v860_v21, %v503_v22  ;;  %v998_v25 = vpop.f32.mrb[3].mxu1 }
 0x233   :  { %v514_v26 = vadd.f32 %v805_v23, %v504_v24 }
 0x235   :  { %1300 = vtanh.f32 %v514_v26 }
 0x23f   :  { %v1301_v27 = vpop.eup %1300 }
 0x240   :  { %1032 = vmatmul.mubr.f32.vlgmr.msra.gmra.mrb[4].mxu0 %v1301_v27 }
 0x241   :  { %1101 = vmatprep.mubr.msk.f32.mxu0 %vm1431_vm0, %v1430_v1  ;;  %v1265_v1 = vpack.c.bf16 %v705_v38, %v704_v37 }
 0x243   :  { %1266 = vmatpush3.bf16.msra.mxu0 %v1265_v1 }
 0x244   :  { %1267 = vmatprep.subr.bf16.mxu0 %v1429_v0 }
 0x247   :  { %1269 = vmatpush3.bf16.msra.mxu0 %v1268_v41 }
 0x248   :  { %1270 = vmatprep.subr.bf16.mxu0 %v1429_v0 }
 0x24b   :  { %1272 = vmatpush3.bf16.msra.mxu0 %v1271_v44 }
 0x24c   :  { %1273 = vmatprep.subr.bf16.mxu0 %v1429_v0 }
 0x24f   :  { %1275 = vmatpush3.bf16.msra.mxu0 %v1274_v47 }
 0x250   :  { %1276 = vmatprep.subr.bf16.mxu0 %v1429_v0 }
 0x253   :  { %1278 = vmatpush3.bf16.msra.mxu0 %v1277_v50 }
 0x254   :  { %1279 = vmatprep.subr.bf16.mxu0 %v1429_v0 }
 0x257   :  { %1281 = vmatpush3.bf16.msra.mxu0 %v1280_v58 }
 0x258   :  { %1282 = vmatprep.subr.bf16.mxu0 %v1429_v0 }
 0x25b   :  { %1284 = vmatpush3.bf16.msra.mxu0 %v1283_v61 }
 0x25c   :  { %1285 = vmatprep.subr.bf16.mxu0 %v1429_v0 }
 0x25f   :  { %1287 = vmatpush3.bf16.msra.mxu0 %v1286_v2 }
 0x313   :  { %v605_v52 = vpop.f32.mrb[4].mxu0 }
 0x314   :  { %v606_v53 = vadd.f32 %v806_v51, %v605_v52  ;;  %v1033_v54 = vpop.f32.mrb[5].mxu0 }
 0x316   :  { %1302 = vtanh.f32 %v606_v53 }
 0x320   :  { %v1303_v55 = vpop.eup %1302 }
 0x321   :  { %1067 = vmatmul.mubr.f32.vlgmr.msra.gmra.mrb[4].mxu1 %v1303_v55 }
 0x3f4   :  { %v699_v4 = vpop.f32.mrb[4].mxu1 }
 0x3f5   :  { %v700_v5 = vadd.f32 %v807_v3, %v699_v4  ;;  %v1068_v6 = vpop.f32.mrb[5].mxu1 }
 0x3f7   :  { %1304 = vtanh.f32 %v700_v5 }
 0x401   :  { %v1305_v7 = vpop.eup %1304 }
 0x402   :  { %1102 = vmatmul.mubr.f32.vlgmr.msra.gmra.mrb[6].mxu0 %v1305_v7 }
 0x4d5   :  { %v793_v9 = vpop.f32.mrb[6].mxu0 }
 0x4d6   :  { %v794_v10 = vadd.f32 %v808_v8, %v793_v9  ;;  %v1103_v11 = vpop.f32.mrb[7].mxu0 }
 0x4d8   :  { %797 = vst [vmem:[%s1814_s12] sm:$0xff] %v794_v10 }
 0x4d9   :  { %802 = vsyncpa [#allocation3], 1 }
 0x4da   :  { %803 = vsyncpa [#allocation5], 1 }
 0x4db   :  { %804 = vsyncpa [#allocation8], 1 }

</bundles_post_ra>
